<compile_context>
chip_gen: v5e
topology: v5e:2x2
jax: 0.10.0
libtpu: 0.0.40
codegen_flags: <defaults>
</compile_context>

<pallas_src>
import functools

import jax
import jax.numpy as jnp
from jax.experimental import pallas as pl
from jax.experimental.pallas import tpu as pltpu

LANE = 128  # TPU vreg lane width


def _round_up(x, m):
    return ((x + m - 1) // m) * m


def _policy_kernel(x_ref, w1_ref, b1_ref, w2_ref, b2_ref, w3_ref, b3_ref,
                   mean_ref, *, act_dim):
    """One batch tile: three fused matmuls + tanh. Weights are VMEM-resident.

    Matmul operands are in w*_ref.dtype (f32 or bf16); accumulation, bias add
    and tanh are f32 (safe on v5e which has no bf16 VPU/EUP).
    """
    cdt = w1_ref.dtype
    x = x_ref[...].astype(cdt)
    h1 = jnp.tanh(
        jnp.dot(x, w1_ref[...], preferred_element_type=jnp.float32) + b1_ref[...]
    )
    h2 = jnp.tanh(
        jnp.dot(h1.astype(cdt), w2_ref[...], preferred_element_type=jnp.float32)
        + b2_ref[...]
    )
    mean = (
        jnp.dot(h2.astype(cdt), w3_ref[...], preferred_element_type=jnp.float32)
        + b3_ref[...]
    )
    # Store only the logical action lanes; OOB batch rows of the ragged last
    # tile are dropped by Pallas on write.
    mean_ref[...] = mean[:, :act_dim].astype(mean_ref.dtype)


def policy_forward(state, params, *, block_b=2048, use_bf16=True):
    """Runs the Policy forward pass with a batch-tiled Pallas kernel.

    Returns (action_mean, sigma) — the parameters of the Normal distribution.
    """
    w1, b1, w2, b2, w3, b3, sigma_param = params
    B, S = state.shape
    H = w1.shape[1]
    A = w3.shape[1]

    # sigma does not depend on state -> compute outside the kernel, with the
    # numerically stable softplus.
    sigma = jax.nn.softplus(sigma_param)

    # Only the (tiny, VMEM-resident) weights get lane-padded; the DMA'd
    # state / mean keep their logical feature dims.
    Hp = _round_up(H, LANE)
    Ap = _round_up(A, LANE)

    cdt = jnp.bfloat16 if use_bf16 else jnp.float32

    # Batch tile: multiple of 8 sublanes (all batch-tiled arrays are f32).
    tb = _round_up(min(block_b, B), 8)
    if B > 1024:
        # Keep >= 2 grid steps so both v7x TensorCores get work.
        tb = min(tb, _round_up(pl.cdiv(B, 2), 8))
    grid = (pl.cdiv(B, tb),)  # ragged last tile handled by Pallas

    def pad2(x, rows, cols, dt):
        return jnp.pad(
            x, ((0, rows - x.shape[0]), (0, cols - x.shape[1]))
        ).astype(dt)

    w1p = pad2(w1, S, Hp, cdt)
    w2p = pad2(w2, Hp, Hp, cdt)
    w3p = pad2(w3, Hp, Ap, cdt)
    b1p = pad2(b1, 1, Hp, jnp.float32)
    b2p = pad2(b2, 1, Hp, jnp.float32)
    b3p = pad2(b3, 1, Ap, jnp.float32)

    wbytes = 2 if use_bf16 else 4
    cost = pl.CostEstimate(
        flops=2 * B * (S * Hp + Hp * Hp + Hp * Ap),
        transcendentals=2 * B * Hp,  # two tanh layers
        bytes_accessed=(
            4 * B * S                                   # state in
            + 4 * B * A                                 # mean out
            + wbytes * (S * Hp + Hp * Hp + Hp * Ap)     # resident weights
            + 4 * (2 * Hp + Ap)                         # biases
        ),
    )

    kernel = functools.partial(_policy_kernel, act_dim=A)

    mean = pl.pallas_call(
        kernel,
        out_shape=jax.ShapeDtypeStruct((B, A), jnp.float32),
        grid=grid,
        in_specs=[
            pl.BlockSpec((tb, S), lambda i: (i, 0)),    # state: tiled over B
            pl.BlockSpec((S, Hp), lambda i: (0, 0)),    # w1: resident
            pl.BlockSpec((1, Hp), lambda i: (0, 0)),    # b1: resident
            pl.BlockSpec((Hp, Hp), lambda i: (0, 0)),   # w2: resident
            pl.BlockSpec((1, Hp), lambda i: (0, 0)),    # b2: resident
            pl.BlockSpec((Hp, Ap), lambda i: (0, 0)),   # w3: resident
            pl.BlockSpec((1, Ap), lambda i: (0, 0)),    # b3: resident
        ],
        out_specs=pl.BlockSpec((tb, A), lambda i: (i, 0)),
        compiler_params=pltpu.CompilerParams(
            dimension_semantics=("parallel",)),          # v7x: 2 TCs split grid
        cost_estimate=cost,
    )(state, w1p, b1p, w2p, b2p, w3p, b3p)

    return mean, sigma


def init_policy_params(key, state_space, action_space, hidden=64):
    """Deterministic init mirroring the PyTorch module:
       - kaiming_normal_ on fc weights (std = sqrt(2 / fan_in))
       - default Linear bias init U(-1/sqrt(fan_in), 1/sqrt(fan_in))
       - sigma parameter initialized to 0.5
    Weights are returned already transposed to (in, out)."""
    k1, k2, k3, kb1, kb2, kb3 = jax.random.split(key, 6)

    def kaiming(k, fan_in, fan_out):
        std = jnp.sqrt(2.0 / fan_in)
        # PyTorch weight is (out, in); we store the transpose (in, out).
        return (jax.random.normal(k, (fan_out, fan_in), jnp.float32) * std).T

    def bias(k, fan_in, fan_out):
        bound = 1.0 / jnp.sqrt(fan_in)
        return jax.random.uniform(
            k, (1, fan_out), jnp.float32, minval=-bound, maxval=bound
        )

    w1 = kaiming(k1, state_space, hidden)
    b1 = bias(kb1, state_space, hidden)
    w2 = kaiming(k2, hidden, hidden)
    b2 = bias(kb2, hidden, hidden)
    w3 = kaiming(k3, hidden, action_space)
    b3 = bias(kb3, hidden, action_space)
    sigma_param = jnp.full((action_space,), 0.5, jnp.float32)
    return (w1, b1, w2, b2, w3, b3, sigma_param)


def policy_forward_ref(state, params):
    """Pure-JAX reference for correctness checking."""
    w1, b1, w2, b2, w3, b3, sigma_param = params
    h1 = jnp.tanh(state @ w1 + b1)
    h2 = jnp.tanh(h1 @ w2 + b2)
    mean = h2 @ w3 + b3
    sigma = jax.nn.softplus(sigma_param)
    return mean, sigma


if __name__ == "__main__":
    # TODO(synk): torch.distributions.Normal (sampling / log_prob) is plain
    # elementwise JAX outside the kernel; we return its (mean, sigma) params.
    batch = 8
    state_space = 4
    action_space = 2
    hidden = 64  # module default

    key = jax.random.PRNGKey(0)
    k_params, k_state, k_state_big = jax.random.split(key, 3)

    params = init_policy_params(k_params, state_space, action_space, hidden)
    state = jax.random.normal(k_state, (batch, state_space), jnp.float32)

    mean_ref, sigma_ref = policy_forward_ref(state, params)

    # f32 path: exact tolerances.
    mean_f32, sigma = policy_forward(state, params, use_bf16=False)
    jax.block_until_ready((mean_f32, sigma))
    assert mean_f32.shape == (batch, action_space)
    assert sigma.shape == (action_space,)
    assert jnp.allclose(mean_f32, mean_ref, atol=1e-5, rtol=1e-5)
    assert jnp.allclose(sigma, sigma_ref, atol=1e-6, rtol=1e-6)

    # bf16 matmul-operand path (default): loose tolerances.
    mean_bf16, _ = policy_forward(state, params)  # use_bf16=True default
    jax.block_until_ready(mean_bf16)
    assert jnp.allclose(mean_bf16, mean_ref, atol=5e-2, rtol=5e-2)

    # Exercise the batch-tiled pipelined path with a ragged last tile
    # (grid = cdiv(1030, 512) = 3).
    big_b = 1030
    state_big = jax.random.normal(k_state_big, (big_b, state_space), jnp.float32)
    mean_big, _ = policy_forward(state_big, params, block_b=512, use_bf16=False)
    jax.block_until_ready(mean_big)
    mean_big_ref, _ = policy_forward_ref(state_big, params)
    assert mean_big.shape == (big_b, action_space)
    assert jnp.allclose(mean_big, mean_big_ref, atol=1e-4, rtol=1e-4)

    # Same big-batch ragged path with bf16 operands (default dtype).
    mean_big16, _ = policy_forward(state_big, params, block_b=512)
    jax.block_until_ready(mean_big16)
    assert jnp.allclose(mean_big16, mean_big_ref, atol=5e-2, rtol=5e-2)

    print("KERNEL_OK")
</pallas_src>

<mosaic_0001>
module attributes {stable_mosaic.version = 11 : i64} {
  func.func @_policy_kernel(%arg0: i32, %arg1: memref<8x4xf32, #tpu.memory_space<vmem>>, %arg2: memref<4x128xf32, #tpu.memory_space<vmem>>, %arg3: memref<1x128xf32, #tpu.memory_space<vmem>>, %arg4: memref<128x128xf32, #tpu.memory_space<vmem>>, %arg5: memref<1x128xf32, #tpu.memory_space<vmem>>, %arg6: memref<128x128xf32, #tpu.memory_space<vmem>>, %arg7: memref<1x128xf32, #tpu.memory_space<vmem>>, %arg8: memref<8x2xf32, #tpu.memory_space<vmem>>) attributes {dimension_semantics = [#tpu.dimension_semantics<parallel>], iteration_bounds = array<i64: 1>, scalar_prefetch = 0 : i64, scratch_operands = 0 : i64, tpu.core_type = #tpu.core_type<tc>, window_params = [{transform_indices = @transform_0, window_bounds = array<i64: 8, 4>}, {pipeline_mode = #tpu.pipeline_mode<synchronous>, transform_indices = @transform_1, window_bounds = array<i64: 4, 128>}, {pipeline_mode = #tpu.pipeline_mode<synchronous>, transform_indices = @transform_2, window_bounds = array<i64: 1, 128>}, {pipeline_mode = #tpu.pipeline_mode<synchronous>, transform_indices = @transform_3, window_bounds = array<i64: 128, 128>}, {pipeline_mode = #tpu.pipeline_mode<synchronous>, transform_indices = @transform_4, window_bounds = array<i64: 1, 128>}, {pipeline_mode = #tpu.pipeline_mode<synchronous>, transform_indices = @transform_5, window_bounds = array<i64: 128, 128>}, {pipeline_mode = #tpu.pipeline_mode<synchronous>, transform_indices = @transform_6, window_bounds = array<i64: 1, 128>}, {transform_indices = @transform_7, window_bounds = array<i64: 8, 2>}]} {
    %c0 = arith.constant 0 : index
    %c0_0 = arith.constant 0 : index
    %0 = vector.load %arg1[%c0, %c0_0] : memref<8x4xf32, #tpu.memory_space<vmem>>, vector<8x4xf32>
    %c0_1 = arith.constant 0 : index
    %c0_2 = arith.constant 0 : index
    %1 = vector.load %arg2[%c0_1, %c0_2] : memref<4x128xf32, #tpu.memory_space<vmem>>, vector<4x128xf32>
    %cst = arith.constant dense<0.000000e+00> : vector<8x128xf32>
    %2 = tpu.matmul %0, %1, %cst {dimension_numbers = #tpu.dot_dimension_numbers<[1], [0], [0], [1], [0, 0, 1, 1], [], []>} : vector<8x4xf32>, vector<4x128xf32>, vector<8x128xf32> -> vector<8x128xf32>
    %c0_3 = arith.constant 0 : index
    %c0_4 = arith.constant 0 : index
    %3 = vector.load %arg3[%c0_3, %c0_4] : memref<1x128xf32, #tpu.memory_space<vmem>>, vector<1x128xf32>
    %4 = vector.broadcast %3 : vector<1x128xf32> to vector<8x128xf32>
    %5 = arith.addf %2, %4 : vector<8x128xf32>
    %6 = math.tanh %5 : vector<8x128xf32>
    %c0_5 = arith.constant 0 : index
    %c0_6 = arith.constant 0 : index
    %7 = vector.load %arg4[%c0_5, %c0_6] : memref<128x128xf32, #tpu.memory_space<vmem>>, vector<128x128xf32>
    %cst_7 = arith.constant dense<0.000000e+00> : vector<8x128xf32>
    %8 = tpu.matmul %6, %7, %cst_7 {dimension_numbers = #tpu.dot_dimension_numbers<[1], [0], [0], [1], [0, 0, 1, 1], [], []>} : vector<8x128xf32>, vector<128x128xf32>, vector<8x128xf32> -> vector<8x128xf32>
    %c0_8 = arith.constant 0 : index
    %c0_9 = arith.constant 0 : index
    %9 = vector.load %arg5[%c0_8, %c0_9] : memref<1x128xf32, #tpu.memory_space<vmem>>, vector<1x128xf32>
    %10 = vector.broadcast %9 : vector<1x128xf32> to vector<8x128xf32>
    %11 = arith.addf %8, %10 : vector<8x128xf32>
    %12 = math.tanh %11 : vector<8x128xf32>
    %c0_10 = arith.constant 0 : index
    %c0_11 = arith.constant 0 : index
    %13 = vector.load %arg6[%c0_10, %c0_11] : memref<128x128xf32, #tpu.memory_space<vmem>>, vector<128x128xf32>
    %cst_12 = arith.constant dense<0.000000e+00> : vector<8x128xf32>
    %14 = tpu.matmul %12, %13, %cst_12 {dimension_numbers = #tpu.dot_dimension_numbers<[1], [0], [0], [1], [0, 0, 1, 1], [], []>} : vector<8x128xf32>, vector<128x128xf32>, vector<8x128xf32> -> vector<8x128xf32>
    %c0_13 = arith.constant 0 : index
    %c0_14 = arith.constant 0 : index
    %15 = vector.load %arg7[%c0_13, %c0_14] : memref<1x128xf32, #tpu.memory_space<vmem>>, vector<1x128xf32>
    %16 = vector.broadcast %15 : vector<1x128xf32> to vector<8x128xf32>
    %17 = arith.addf %14, %16 : vector<8x128xf32>
    %18 = vector.extract_strided_slice %17 {offsets = [0, 0], sizes = [8, 2], strides = [1, 1]} : vector<8x128xf32> to vector<8x2xf32>
    %c0_15 = arith.constant 0 : index
    %c0_16 = arith.constant 0 : index
    %19 = vector.load %arg8[%c0_15, %c0_16] : memref<8x2xf32, #tpu.memory_space<vmem>>, vector<8x2xf32>
    tpu.vector_store %arg8[%c0_15, %c0_16], %18 {strides = array<i32>} : memref<8x2xf32, #tpu.memory_space<vmem>>, vector<8x2xf32>,
    return
  }
  func.func @transform_0(%arg0: i32) -> (i32, i32) {
    %c0_i32 = arith.constant 0 : i32
    %c0_i32_0 = arith.constant 0 : i32
    return %arg0, %c0_i32 : i32, i32
  }
  func.func @transform_1(%arg0: i32) -> (i32, i32) {
    %c0_i32 = arith.constant 0 : i32
    %c0_i32_0 = arith.constant 0 : i32
    %c0_i32_1 = arith.constant 0 : i32
    return %c0_i32, %c0_i32_0 : i32, i32
  }
  func.func @transform_2(%arg0: i32) -> (i32, i32) {
    %c0_i32 = arith.constant 0 : i32
    %c0_i32_0 = arith.constant 0 : i32
    %c0_i32_1 = arith.constant 0 : i32
    return %c0_i32, %c0_i32_0 : i32, i32
  }
  func.func @transform_3(%arg0: i32) -> (i32, i32) {
    %c0_i32 = arith.constant 0 : i32
    %c0_i32_0 = arith.constant 0 : i32
    %c0_i32_1 = arith.constant 0 : i32
    return %c0_i32, %c0_i32_0 : i32, i32
  }
  func.func @transform_4(%arg0: i32) -> (i32, i32) {
    %c0_i32 = arith.constant 0 : i32
    %c0_i32_0 = arith.constant 0 : i32
    %c0_i32_1 = arith.constant 0 : i32
    return %c0_i32, %c0_i32_0 : i32, i32
  }
  func.func @transform_5(%arg0: i32) -> (i32, i32) {
    %c0_i32 = arith.constant 0 : i32
    %c0_i32_0 = arith.constant 0 : i32
    %c0_i32_1 = arith.constant 0 : i32
    return %c0_i32, %c0_i32_0 : i32, i32
  }
  func.func @transform_6(%arg0: i32) -> (i32, i32) {
    %c0_i32 = arith.constant 0 : i32
    %c0_i32_0 = arith.constant 0 : i32
    %c0_i32_1 = arith.constant 0 : i32
    return %c0_i32, %c0_i32_0 : i32, i32
  }
  func.func @transform_7(%arg0: i32) -> (i32, i32) {
    %c0_i32 = arith.constant 0 : i32
    %c0_i32_0 = arith.constant 0 : i32
    return %arg0, %c0_i32 : i32, i32
  }
}

</mosaic_0001>

<bundles_post_ra>
// kernel: tpu_custom_call.1
= control target key start
LH: loop header
LB: loop body
LE: loop exit
PB: predicated region body
PF: predicated region fallthrough
CT: control target
= control target key end

     0   :  { %12 = vsyncpa [#allocation3], 0  ;;  %s315_s0 = inlined_call_operand.vmem [shape: f32[8,4], index: 0, kind: input, shape index: {}]   ;;  %s316_s1 = inlined_call_operand.vmem [shape: f32[4,128], index: 1, kind: input, shape index: {}]   ;;  %s317_s2 = inlined_call_operand.vmem [shape: f32[1,128], index: 2, kind: input, shape index: {}]   ;;  %s318_s3 = inlined_call_operand.hbm [shape: f32[128,128], index: 3, kind: input, shape index: {}]   ;;  %s319_s4 = inlined_call_operand.vmem [shape: f32[1,128], index: 4, kind: input, shape index: {}]   ;;  %s320_s5 = inlined_call_operand.hbm [shape: f32[128,128], index: 5, kind: input, shape index: {}]   ;;  %s321_s6 = inlined_call_operand.vmem [shape: f32[1,128], index: 6, kind: input, shape index: {}]   ;;  %s322_s7 = inlined_call_operand.vmem [shape: f32[8,2], index: 7, kind: output, shape index: {}]  }
   0x1   :  { %s24_s26 = sshll.u32 %s318_s3, 4  ;;  %s25_s26 = int_to_ptr.hbm [resolvable:$true] %s24_s26 }
   0x2   :  { %13 = vsyncpa [#allocation5], 0  ;;  %s247_s27 = smov [#allocation2]   ;;  %s39_s8 = sshll.u32 %s320_s5, 4  ;;  %s40_s8 = int_to_ptr.hbm [resolvable:$true] %s39_s8 }
   0x3   :  { %s26_s28 = sshll.u32 %s247_s27, 4  ;;  %s248_s9 = smov 128   ;;  %s27_s28 = int_to_ptr.vmem [resolvable:$true] %s26_s28 }
   0x4   :  { %s249_s10 = smov 8   ;;  %s250_s11 = smov [#allocation4]  }
   0x5   :  { %32 = dma.hbm_to_vmem [thread:$0]  %s25_s26, 2048, %s27_s28, [#allocation3], %s248_s9, %s248_s9, %s249_s10  }
   0x6   :  { %s41_s12 = sshll.u32 %s250_s11, 4  ;;  %s42_s12 = int_to_ptr.vmem [resolvable:$true] %s41_s12 }
   0x7   :  { %47 = dma.hbm_to_vmem [thread:$0]  %s40_s8, 2048, %s42_s12, [#allocation5], %s248_s9, %s248_s9, %s249_s10  }
   0x8   :  { %243 = dma.done.wait [#allocation3], 2048  }
   0x9   :  { %244 = vsyncadd [#allocation3], 4294965248 }
   0xa   :  { %245 = dma.done.wait [#allocation5], 2048  }
   0xb   :  { %246 = vsyncadd [#allocation5], 4294965248  ;;  %vm68_vm0 = vcmask 1043456   ;;  %vm64_vm1 = vcmask 31744   ;;  %v59_v0 = vld [vmem:[%s316_s1] sm:$0xf] }
   0xc   :  { %v58_v1 = vld [vmem:[%s315_s0] sm:$0xff]  ;;  %v108_v2 = vld [vmem:[#allocation2 + $0x78] sm:$0xff]  ;;  %182 = vmatpush.msk.msra.mxu0 %vm68_vm0, %v59_v0  ;;  %v107_v3 = vld [vmem:[#allocation2 + $0x70] sm:$0xff]  ;;  %vm174_vm2 = vcmask 15360  }
   0xd   :  { %113 = vmatpush.msra.mxu1 %v108_v2  ;;  %183 = vmatmul.msk.f32.vlgmr.msra.gmra.mxu0 %vm64_vm1, %v58_v1  ;;  %v106_v4 = vld [vmem:[#allocation2 + $0x68] sm:$0xff]  ;;  %v105_v5 = vld [vmem:[#allocation2 + $0x60] sm:$0xff]  ;;  %v104_v6 = vld [vmem:[#allocation2 + $0x58] sm:$0xff] }
   0xe   :  { %v103_v7 = vld [vmem:[#allocation2 + $0x50] sm:$0xff]  ;;  %v102_v8 = vld [vmem:[#allocation2 + $0x48] sm:$0xff]  ;;  %v101_v9 = vld [vmem:[#allocation2 + $0x40] sm:$0xff] }
   0xf   :  { %114 = vmatpush.msra.mxu1 %v107_v3  ;;  %v100_v10 = vld [vmem:[#allocation2 + $0x38] sm:$0xff]  ;;  %v99_v11 = vld [vmem:[#allocation2 + $0x30] sm:$0xff]  ;;  %v98_v12 = vld [vmem:[#allocation2 + $0x28] sm:$0xff] }
  0x10   :  { %v97_v13 = vld [vmem:[#allocation2 + $0x20] sm:$0xff]  ;;  %v96_v14 = vld [vmem:[#allocation2 + $0x18] sm:$0xff]  ;;  %v95_v15 = vld [vmem:[#allocation2 + $0x10] sm:$0xff] }
  0x11   :  { %115 = vmatpush.msra.mxu1 %v106_v4  ;;  %v94_v16 = vld [vmem:[#allocation2 + $0x8] sm:$0xff]  ;;  %v93_v17 = vld [vmem:[#allocation2] sm:$0xff]  ;;  %v149_v18 = vld [vmem:[#allocation4 + $0x78] sm:$0xff] }
  0x12   :  { %v148_v19 = vld [vmem:[#allocation4 + $0x70] sm:$0xff]  ;;  %154 = vmatpush.msra.mxu2 %v149_v18  ;;  %v147_v20 = vld [vmem:[#allocation4 + $0x68] sm:$0xff]  ;;  %v146_v21 = vld [vmem:[#allocation4 + $0x60] sm:$0xff] }
  0x13   :  { %116 = vmatpush.msra.mxu1 %v105_v5  ;;  %v145_v22 = vld [vmem:[#allocation4 + $0x58] sm:$0xff]  ;;  %v144_v23 = vld [vmem:[#allocation4 + $0x50] sm:$0xff]  ;;  %v143_v24 = vld [vmem:[#allocation4 + $0x48] sm:$0xff] }
  0x14   :  { %155 = vmatpush.msra.mxu2 %v148_v19  ;;  %v142_v25 = vld [vmem:[#allocation4 + $0x40] sm:$0xff]  ;;  %v141_v26 = vld [vmem:[#allocation4 + $0x38] sm:$0xff]  ;;  %v140_v27 = vld [vmem:[#allocation4 + $0x30] sm:$0xff] }
  0x15   :  { %117 = vmatpush.msra.mxu1 %v104_v6  ;;  %v139_v28 = vld [vmem:[#allocation4 + $0x28] sm:$0xff]  ;;  %v188_v29 = vld [vmem:[%s317_s2] ss:$0 sm:$0xff]  ;;  %v137_v34 = vld [vmem:[#allocation4 + $0x18] sm:$0xff] }
  0x16   :  { %156 = vmatpush.msra.mxu2 %v147_v20  ;;  %v138_v33 = vld [vmem:[#allocation4 + $0x20] sm:$0xff]  ;;  %v136_v35 = vld [vmem:[#allocation4 + $0x10] sm:$0xff]  ;;  %v135_v36 = vld [vmem:[#allocation4 + $0x8] sm:$0xff] }
  0x17   :  { %118 = vmatpush.msra.mxu1 %v103_v7  ;;  %v134_v37 = vld [vmem:[#allocation4] sm:$0xff] }
  0x18   :  { %157 = vmatpush.msra.mxu2 %v146_v21  ;;  %v189_v38 = vld [vmem:[%s319_s4] ss:$0 sm:$0xff] }
  0x19   :  { %119 = vmatpush.msra.mxu1 %v102_v8  ;;  %v190_v42 = vld [vmem:[%s321_s6] ss:$0 sm:$0xff] }
  0x1a   :  { %158 = vmatpush.msra.mxu2 %v145_v22 }
  0x1b   :  { %120 = vmatpush.msra.mxu1 %v101_v9 }
  0x1c   :  { %159 = vmatpush.msra.mxu2 %v144_v23 }
  0x1d   :  { %121 = vmatpush.msra.mxu1 %v100_v10 }
  0x1e   :  { %160 = vmatpush.msra.mxu2 %v143_v24 }
  0x1f   :  { %122 = vmatpush.msra.mxu1 %v99_v11 }
  0x20   :  { %161 = vmatpush.msra.mxu2 %v142_v25 }
  0x21   :  { %123 = vmatpush.msra.mxu1 %v98_v12 }
  0x22   :  { %162 = vmatpush.msra.mxu2 %v141_v26 }
  0x23   :  { %124 = vmatpush.msra.mxu1 %v97_v13 }
  0x24   :  { %163 = vmatpush.msra.mxu2 %v140_v27 }
  0x25   :  { %125 = vmatpush.msra.mxu1 %v96_v14 }
  0x26   :  { %164 = vmatpush.msra.mxu2 %v139_v28 }
  0x27   :  { %126 = vmatpush.msra.mxu1 %v95_v15 }
  0x28   :  { %165 = vmatpush.msra.mxu2 %v138_v33 }
  0x29   :  { %127 = vmatpush.msra.mxu1 %v94_v16 }
  0x2a   :  { %166 = vmatpush.msra.mxu2 %v137_v34 }
  0x2b   :  { %128 = vmatpush.msra.mxu1 %v93_v17 }
  0x2c   :  { %167 = vmatpush.msra.mxu2 %v136_v35 }
  0x2e   :  { %168 = vmatpush.msra.mxu2 %v135_v36 }
  0x30   :  { %169 = vmatpush.msra.mxu2 %v134_v37 }
  0x8a   :  { %v89_v30 = vpop.f32.mrf.mxu0 }
  0x8b   :  { %v90_v31 = vadd.f32 %v188_v29, %v89_v30 }
  0x8d   :  { %191 = vtanh.f32 %v90_v31 }
  0x93   :  { %v192_v32 = vpop.eup %191 }
  0x94   :  { %129 = vmatmul.f32.vlgmr.msra.gmra.mxu1 %v192_v32 }
 0x111   :  { %v130_v39 = vpop.f32.mrf.mxu1 }
 0x112   :  { %v131_v40 = vadd.f32 %v189_v38, %v130_v39 }
 0x114   :  { %193 = vtanh.f32 %v131_v40 }
 0x11a   :  { %v194_v41 = vpop.eup %193 }
 0x11b   :  { %170 = vmatmul.f32.vlgmr.msra.gmra.mxu2 %v194_v41 }
 0x19e   :  { %v171_v43 = vpop.f32.mrf.mxu2 }
 0x19f   :  { %v172_v44 = vadd.f32 %v190_v42, %v171_v43 }
 0x1a1   :  { %175 = vst.msk [vmem:[%s322_s7] sm:$0xff] %vm174_vm2, %v172_v44 }
 0x1a2   :  { %180 = vsyncpa [#allocation3], 1 }
 0x1a3   :  { %181 = vsyncpa [#allocation5], 1 }

</bundles_post_ra>
